<compile_context>
chip_gen: v5e
topology: v5e:2x2
jax: 0.10.0
libtpu: 0.0.40
codegen_flags: <defaults>
</compile_context>

<pallas_src>
import numpy as np

import jax
import jax.numpy as jnp
from jax.experimental import pallas as pl
from jax.experimental.pallas import tpu as pltpu

NEG_SLOPE = 0.01   # nn.LeakyReLU default
BN_EPS = 1e-5      # nn.BatchNorm1d default
_LANE = 128


def _leaky_relu(x):
    return jnp.where(x >= 0, x, NEG_SLOPE * x)


def _round_up(x, m):
    return -(-x // m) * m


def _choose_tile_rows(num_rows, row_bytes):
    """Row-tile size: multiple of 32 (f32/bf16 sublane tiling), VMEM-budgeted,
    with enough grid steps for pipelining and v7x megacore sharding."""
    SUB = 32
    MIN_TILE_BYTES = 128 * 1024      # keep each pipelined DMA >= ~128 KiB
    VMEM_TILE_BUDGET = 4 << 20       # ~4 MiB/tile -> <~9 MiB double-buffered (fits v5e 16 MiB scoped)
    TARGET_TILES = 16                # >= 8 grid steps per TensorCore on v7x

    tr_hi = max(SUB, (VMEM_TILE_BUDGET // max(row_bytes, 1)) // SUB * SUB)
    tr_lo = min(tr_hi, _round_up(max(1, MIN_TILE_BYTES // max(row_bytes, 1)), SUB))
    tr = _round_up(max(1, -(-num_rows // TARGET_TILES)), SUB)
    tr = min(max(tr, tr_lo), tr_hi)
    # Never exceed the (rounded-down) row count so blocks stay <= array extent
    # whenever R >= 32; smaller R degenerates to a single masked tile.
    tr = min(tr, max(SUB, num_rows // SUB * SUB))
    return max(tr, SUB)


def _fold_matrix(rows, f):
    """(rows, f) 0/1 matrix with fold[q, q % f] = 1 (sums M feature segments)."""
    r = jnp.arange(rows, dtype=jnp.int32)[:, None]
    c = jnp.arange(f, dtype=jnp.int32)[None, :]
    return (r == c + (r // f) * f).astype(jnp.float32)


def _aggregate_over_m(edge_ref, fold, m, f):
    """Sum the M feature segments of a (TR, M*F) tile -> (TR, F) in f32.

    Aligned 128-lane chunks are summed with plain VPU adds; any remaining
    sub-128-lane fold is a single 0/1 matmul on the MXU (which is idle / has
    slack in this DMA-bound kernel) instead of lane-shuffling slice adds.
    """
    mf = m * f
    if m == 1:
        return edge_ref[...].astype(jnp.float32)
    if f % _LANE == 0:
        # Every F-wide segment is 128-lane aligned: pure VPU adds.
        acc = edge_ref[:, 0:f].astype(jnp.float32)
        for i in range(1, m):
            acc = acc + edge_ref[:, i * f:(i + 1) * f].astype(jnp.float32)
        return acc
    if mf % _LANE == 0 and _LANE % f == 0:
        # Pre-sum aligned 128-lane chunks (VPU), then fold 128 -> F on the MXU.
        acc = edge_ref[:, 0:_LANE].astype(jnp.float32)
        for c in range(1, mf // _LANE):
            acc = acc + edge_ref[:, c * _LANE:(c + 1) * _LANE].astype(jnp.float32)
        return jnp.dot(acc, fold, preferred_element_type=jnp.float32)
    # Generic fallback (any M, F): one 0/1 fold matmul over the whole M*F axis.
    return jnp.dot(edge_ref[...].astype(jnp.float32), fold,
                   preferred_element_type=jnp.float32)


def _make_node_update_kernel(m, f, tile_rows, rows_total, has_fold):
    """Pass-1 kernel: M-aggregation + Conv2d channel mix + LeakyReLU + Conv1d
    matmul, plus per-tile centered BatchNorm partials (sum, M2)."""

    def kernel(*refs):
        if has_fold:
            node_ref, edge_ref, w2d_ref, w1t_ref, fold_ref, y_ref, stats_ref = refs
            fold = fold_ref[...]
        else:
            node_ref, edge_ref, w2d_ref, w1t_ref, y_ref, stats_ref = refs
            fold = None

        # node_ref : (TR, F)        VMEM (input dtype)
        # edge_ref : (TR, M*F)      VMEM (input dtype, lane-dense)
        # w2d_ref  : (2,)           SMEM (Conv2d(2->1, k=1) channel-mix scalars)
        # w1t_ref  : (F, F_out)     VMEM (Conv1d weight, pre-transposed, f32)
        # fold_ref : (L, F)         VMEM 0/1 fold matrix (optional)
        # y_ref    : (TR, F_out)    VMEM (pre-BN activations -> HBM)
        # stats_ref: (1, 2, F_out)  VMEM per-tile [sum(y); centered M2]
        aggr = _aggregate_over_m(edge_ref, fold, m, f)                    # (TR, F)
        node = node_ref[...].astype(jnp.float32)
        x = _leaky_relu(w2d_ref[0] * node + w2d_ref[1] * aggr)            # (TR, F)
        y = jnp.dot(x, w1t_ref[...], preferred_element_type=jnp.float32)  # (TR, F_out)
        y_ref[...] = y

        # Per-tile centered BN partials; rows past the true R (masked last tile
        # of the cdiv grid) are excluded so padding never shifts the statistics.
        i = pl.program_id(0)
        row = jax.lax.broadcasted_iota(jnp.int32, (tile_rows, 1), 0) + i * tile_rows
        valid = row < rows_total                                          # (TR, 1)
        n_valid = jnp.minimum(tile_rows, rows_total - i * tile_rows).astype(jnp.float32)
        y_v = jnp.where(valid, y, 0.0)
        t_sum = jnp.sum(y_v, axis=0, keepdims=True)                       # (1, F_out)
        mu = t_sum / n_valid
        cen = jnp.where(valid, y - mu, 0.0)
        t_m2 = jnp.sum(cen * cen, axis=0, keepdims=True)                  # (1, F_out)
        stats_ref[0, 0:1, :] = t_sum
        stats_ref[0, 1:2, :] = t_m2

    return kernel


def node_update_forward(node_feats, edge_feats, w2d, w1, gamma, beta):
    B, N, F = node_feats.shape
    M = edge_feats.shape[2]
    F_out, F_in = w1.shape
    assert F_in == F, (F_in, F)

    R = B * N
    in_bytes = jnp.dtype(node_feats.dtype).itemsize
    row_bytes = (M * F + F) * in_bytes + F_out * 4
    TR = _choose_tile_rows(R, row_bytes)
    n_tiles = -(-R // TR)

    # Free row-major reshapes; inputs keep their HBM dtype (no wrapper upcast).
    node2d = node_feats.reshape(R, F)
    edge2d = edge_feats.reshape(R, M * F)
    w1_t = jnp.transpose(w1).astype(jnp.float32)                # (F, F_out)
    w2d_s = w2d.reshape(2).astype(jnp.float32)

    need_fold = (M > 1) and (F % _LANE != 0)
    fold = None
    fold_rows = 0
    if need_fold:
        fold_rows = _LANE if ((M * F) % _LANE == 0 and _LANE % F == 0) else M * F
        fold = _fold_matrix(fold_rows, F)

    in_specs = [
        pl.BlockSpec((TR, F), lambda i: (i, 0)),
        pl.BlockSpec((TR, M * F), lambda i: (i, 0)),
        pl.BlockSpec(memory_space=pltpu.MemorySpace.SMEM),
        pl.BlockSpec((F, F_out), lambda i: (0, 0)),
    ]
    args = [node2d, edge2d, w2d_s, w1_t]
    if need_fold:
        in_specs.append(pl.BlockSpec((fold_rows, F), lambda i: (0, 0)))
        args.append(fold)

    fold_flops = 2 * R * fold_rows * F if need_fold else 0
    y2d, stats = pl.pallas_call(
        _make_node_update_kernel(M, F, TR, R, need_fold),
        out_shape=(
            jax.ShapeDtypeStruct((R, F_out), jnp.float32),
            jax.ShapeDtypeStruct((n_tiles, 2, F_out), jnp.float32),
        ),
        grid=(n_tiles,),
        in_specs=in_specs,
        out_specs=(
            pl.BlockSpec((TR, F_out), lambda i: (i, 0)),
            pl.BlockSpec((1, 2, F_out), lambda i: (i, 0, 0)),
        ),
        compiler_params=pltpu.CompilerParams(dimension_semantics=("parallel",)),
        cost_estimate=pl.CostEstimate(
            flops=R * M * F + fold_flops + 2 * R * F * F_out + 8 * R * F_out,
            transcendentals=0,
            bytes_accessed=R * (M * F + F) * in_bytes + R * F_out * 4
                           + n_tiles * 2 * F_out * 4,
        ),
    )(*args)

    # ---- Tiny XLA epilogue on (F_out,)-sized vectors: Chan-combine the per-tile
    #      centered partials into training-mode BN statistics. ----
    counts = np.minimum(TR, R - TR * np.arange(n_tiles)).astype(np.float32)
    counts = jnp.asarray(counts)[:, None]                        # (n_tiles, 1)
    sums = stats[:, 0, :]
    m2s = stats[:, 1, :]
    mean = jnp.sum(sums, axis=0) / jnp.float32(R)
    mean_k = sums / counts
    m2 = jnp.sum(m2s, axis=0) + jnp.sum(counts * (mean_k - mean[None, :]) ** 2, axis=0)
    var = m2 / jnp.float32(R)                                    # biased (training-mode) var
    inv_std = jax.lax.rsqrt(var + BN_EPS)
    g = gamma.reshape(-1).astype(jnp.float32)
    b = beta.reshape(-1).astype(jnp.float32)
    scale = (g * inv_std)[None, :]
    shift = (b - mean * g * inv_std)[None, :]

    # ---- Trailing affine + LeakyReLU: trivial elementwise, left to XLA (roofline,
    #      fuses with the reshape / downstream consumers). ----
    out = _leaky_relu(y2d * scale + shift).astype(node_feats.dtype)
    return out.reshape(B, N, F_out)


def node_update_reference(node_feats, edge_feats, w2d, w1, gamma, beta):
    """Pure-JAX reference mirroring the PyTorch forward (training-mode BN)."""
    aggr = jnp.sum(edge_feats, axis=2)
    x = _leaky_relu(w2d[0] * node_feats + w2d[1] * aggr)
    y = jnp.einsum("bnf,of->bno", x, w1)
    mean = jnp.mean(y, axis=(0, 1), keepdims=True)
    var = jnp.mean((y - mean) ** 2, axis=(0, 1), keepdims=True)
    z = (y - mean) / jnp.sqrt(var + BN_EPS) * gamma.reshape(1, 1, -1) + beta.reshape(1, 1, -1)
    return _leaky_relu(z)


if __name__ == "__main__":
    fwd = jax.jit(node_update_forward)

    def run_case(key, B, N, M, F, F_out):
        k_node, k_edge, k_w2d, k_w1, k_g, k_b = jax.random.split(key, 6)
        node_feats = jax.random.normal(k_node, (B, N, F), dtype=jnp.float32)
        edge_feats = jax.random.normal(k_edge, (B, N, M, F), dtype=jnp.float32)
        # Parameters (shapes from the module __init__):
        #   Conv2d(2, 1, k=1, bias=False)     -> weight (1, 2, 1, 1), kept as 2 scalars
        #   Conv1d(F, F_out, k=1, bias=False) -> weight (F_out, F)
        #   BatchNorm1d(F_out)                -> gamma, beta (non-trivial for a real check)
        w2d = jax.random.normal(k_w2d, (2,), dtype=jnp.float32) * 0.5
        w1 = jax.random.normal(k_w1, (F_out, F), dtype=jnp.float32) * (1.0 / jnp.sqrt(F))
        gamma = 1.0 + 0.1 * jax.random.normal(k_g, (F_out,), dtype=jnp.float32)
        beta = 0.1 * jax.random.normal(k_b, (F_out,), dtype=jnp.float32)

        out = jax.block_until_ready(fwd(node_feats, edge_feats, w2d, w1, gamma, beta))
        ref = node_update_reference(node_feats, edge_feats, w2d, w1, gamma, beta)
        assert out.shape == (B, N, F_out), out.shape
        max_err = jnp.max(jnp.abs(out - ref))
        assert jnp.allclose(out, ref, atol=2e-4, rtol=2e-4), \
            f"mismatch vs reference, max|err|={max_err}"

    key = jax.random.PRNGKey(0)
    k1, k2 = jax.random.split(key)

    # num_node_feats = 32, ratio = [1]:  R = B*N = 1024 -> TR = 128, grid = (8,)
    # (pipelined DMA, 4 steps per v7x TensorCore, divisible rows).
    run_case(k1, B=2, N=512, M=8, F=32, F_out=32)

    # Awkward shapes: R = 111 (cdiv grid with masked partial tiles, no padding copy)
    # and M*F = 160 (exercises the generic MXU fold path).
    run_case(k2, B=3, N=37, M=5, F=32, F_out=32)

    print("KERNEL_OK")
</pallas_src>

<mosaic_0001>
module attributes {stable_mosaic.version = 11 : i64} {
  func.func @kernel(%arg0: i32, %arg1: memref<128x32xf32, #tpu.memory_space<vmem>>, %arg2: memref<128x256xf32, #tpu.memory_space<vmem>>, %arg3: memref<2xf32, #tpu.memory_space<smem>>, %arg4: memref<32x32xf32, #tpu.memory_space<vmem>>, %arg5: memref<128x32xf32, #tpu.memory_space<vmem>>, %arg6: memref<128x32xf32, #tpu.memory_space<vmem>>, %arg7: memref<1x2x32xf32, #tpu.memory_space<vmem>>) attributes {dimension_semantics = [#tpu.dimension_semantics<parallel>], iteration_bounds = array<i64: 8>, scalar_prefetch = 0 : i64, scratch_operands = 0 : i64, tpu.core_type = #tpu.core_type<tc>, window_params = [{transform_indices = @transform_0, window_bounds = array<i64: 128, 32>}, {transform_indices = @transform_1, window_bounds = array<i64: 128, 256>}, {transform_indices = @transform_2, window_bounds = array<i64: 2>}, {pipeline_mode = #tpu.pipeline_mode<synchronous>, transform_indices = @transform_3, window_bounds = array<i64: 32, 32>}, {pipeline_mode = #tpu.pipeline_mode<synchronous>, transform_indices = @transform_4, window_bounds = array<i64: 128, 32>}, {transform_indices = @transform_5, window_bounds = array<i64: 128, 32>}, {transform_indices = @transform_6, window_bounds = array<i64: 1, 2, 32>}]} {
    %c0 = arith.constant 0 : index
    %c0_0 = arith.constant 0 : index
    %0 = vector.load %arg5[%c0, %c0_0] : memref<128x32xf32, #tpu.memory_space<vmem>>, vector<128x32xf32>
    %c0_1 = arith.constant 0 : index
    %c0_2 = arith.constant 0 : index
    %1 = vector.load %arg2[%c0_1, %c0_2] : memref<128x256xf32, #tpu.memory_space<vmem>>, vector<128x128xf32>
    %c0_3 = arith.constant 0 : index
    %c128 = arith.constant 128 : index
    %2 = vector.load %arg2[%c0_3, %c128] : memref<128x256xf32, #tpu.memory_space<vmem>>, vector<128x128xf32>
    %3 = arith.addf %1, %2 : vector<128x128xf32>
    %cst = arith.constant dense<0.000000e+00> : vector<128x32xf32>
    %4 = tpu.matmul %3, %0, %cst {dimension_numbers = #tpu.dot_dimension_numbers<[1], [0], [0], [1], [0, 0, 1, 1], [], []>} : vector<128x128xf32>, vector<128x32xf32>, vector<128x32xf32> -> vector<128x32xf32>
    %c0_4 = arith.constant 0 : index
    %c0_5 = arith.constant 0 : index
    %5 = vector.load %arg1[%c0_4, %c0_5] : memref<128x32xf32, #tpu.memory_space<vmem>>, vector<128x32xf32>
    %c0_6 = arith.constant 0 : index
    %6 = memref.load %arg3[%c0_6] : memref<2xf32, #tpu.memory_space<smem>>
    %7 = vector.broadcast %6 : f32 to vector<128x32xf32>
    %8 = arith.mulf %7, %5 : vector<128x32xf32>
    %c1 = arith.constant 1 : index
    %9 = memref.load %arg3[%c1] : memref<2xf32, #tpu.memory_space<smem>>
    %10 = vector.broadcast %9 : f32 to vector<128x32xf32>
    %11 = arith.mulf %10, %4 : vector<128x32xf32>
    %12 = arith.addf %8, %11 : vector<128x32xf32>
    %cst_7 = arith.constant 0.000000e+00 : f32
    %13 = vector.broadcast %cst_7 : f32 to vector<128x32xf32>
    %14 = arith.cmpf oge, %12, %13 : vector<128x32xf32>
    %cst_8 = arith.constant 0.00999999977 : f32
    %15 = vector.broadcast %cst_8 : f32 to vector<128x32xf32>
    %16 = arith.mulf %15, %12 : vector<128x32xf32>
    %17 = arith.select %14, %12, %16 : vector<128x32xi1>, vector<128x32xf32>
    %c0_9 = arith.constant 0 : index
    %c0_10 = arith.constant 0 : index
    %18 = vector.load %arg4[%c0_9, %c0_10] : memref<32x32xf32, #tpu.memory_space<vmem>>, vector<32x32xf32>
    %cst_11 = arith.constant dense<0.000000e+00> : vector<128x32xf32>
    %19 = tpu.matmul %17, %18, %cst_11 {dimension_numbers = #tpu.dot_dimension_numbers<[1], [0], [0], [1], [0, 0, 1, 1], [], []>} : vector<128x32xf32>, vector<32x32xf32>, vector<128x32xf32> -> vector<128x32xf32>
    %c0_12 = arith.constant 0 : index
    %c0_13 = arith.constant 0 : index
    %20 = vector.load %arg6[%c0_12, %c0_13] : memref<128x32xf32, #tpu.memory_space<vmem>>, vector<128x32xf32>
    tpu.vector_store %arg6[%c0_12, %c0_13], %19 {strides = array<i32>} : memref<128x32xf32, #tpu.memory_space<vmem>>, vector<128x32xf32>,
    %21 = tpu.iota {dimensions = array<i32: 0>} : vector<128x1xi32>
    %c128_i32 = arith.constant 128 : i32
    %22 = arith.muli %arg0, %c128_i32 : i32
    %23 = vector.broadcast %22 : i32 to vector<128x1xi32>
    %24 = arith.addi %21, %23 : vector<128x1xi32>
    %c1024_i32 = arith.constant 1024 : i32
    %25 = vector.broadcast %c1024_i32 : i32 to vector<128x1xi32>
    %26 = arith.cmpi slt, %24, %25 : vector<128x1xi32>
    %c128_i32_14 = arith.constant 128 : i32
    %27 = arith.muli %arg0, %c128_i32_14 : i32
    %c1024_i32_15 = arith.constant 1024 : i32
    %28 = arith.subi %c1024_i32_15, %27 : i32
    %c128_i32_16 = arith.constant 128 : i32
    %29 = arith.minsi %c128_i32_16, %28 : i32
    %30 = arith.sitofp %29 : i32 to f32
    %cst_17 = arith.constant 0.000000e+00 : f32
    %31 = vector.shape_cast %26 : vector<128x1xi1> to vector<128x1xi1>
    %32 = vector.broadcast %31 : vector<128x1xi1> to vector<128x32xi1>
    %33 = vector.broadcast %cst_17 : f32 to vector<128x32xf32>
    %34 = arith.select %32, %19, %33 : vector<128x32xi1>, vector<128x32xf32>
    %cst_18 = arith.constant dense<0.000000e+00> : vector<32xf32>
    %35 = vector.multi_reduction <add>, %34, %cst_18 [0] : vector<128x32xf32> to vector<32xf32>
    %36 = vector.shape_cast %35 : vector<32xf32> to vector<1x32xf32>
    %37 = vector.broadcast %30 : f32 to vector<1x32xf32>
    %38 = arith.divf %36, %37 : vector<1x32xf32>
    %39 = vector.broadcast %38 : vector<1x32xf32> to vector<128x32xf32>
    %40 = arith.subf %19, %39 : vector<128x32xf32>
    %cst_19 = arith.constant 0.000000e+00 : f32
    %41 = vector.shape_cast %26 : vector<128x1xi1> to vector<128x1xi1>
    %42 = vector.broadcast %41 : vector<128x1xi1> to vector<128x32xi1>
    %43 = vector.broadcast %cst_19 : f32 to vector<128x32xf32>
    %44 = arith.select %42, %40, %43 : vector<128x32xi1>, vector<128x32xf32>
    %45 = arith.mulf %44, %44 : vector<128x32xf32>
    %cst_20 = arith.constant dense<0.000000e+00> : vector<32xf32>
    %46 = vector.multi_reduction <add>, %45, %cst_20 [0] : vector<128x32xf32> to vector<32xf32>
    %47 = vector.shape_cast %46 : vector<32xf32> to vector<1x32xf32>
    %c0_21 = arith.constant 0 : index
    %c0_22 = arith.constant 0 : index
    %c0_23 = arith.constant 0 : index
    %48 = vector.load %arg7[%c0_21, %c0_22, %c0_23] : memref<1x2x32xf32, #tpu.memory_space<vmem>>, vector<1x1x32xf32>
    %49 = vector.shape_cast %48 : vector<1x1x32xf32> to vector<1x32xf32>
    %50 = vector.shape_cast %36 : vector<1x32xf32> to vector<1x1x32xf32>
    tpu.vector_store %arg7[%c0_21, %c0_22, %c0_23], %50 {strides = array<i32>} : memref<1x2x32xf32, #tpu.memory_space<vmem>>, vector<1x1x32xf32>,
    %c0_24 = arith.constant 0 : index
    %c1_25 = arith.constant 1 : index
    %c0_26 = arith.constant 0 : index
    %51 = vector.load %arg7[%c0_24, %c1_25, %c0_26] : memref<1x2x32xf32, #tpu.memory_space<vmem>>, vector<1x1x32xf32>
    %52 = vector.shape_cast %51 : vector<1x1x32xf32> to vector<1x32xf32>
    %53 = vector.shape_cast %47 : vector<1x32xf32> to vector<1x1x32xf32>
    tpu.vector_store %arg7[%c0_24, %c1_25, %c0_26], %53 {strides = array<i32>} : memref<1x2x32xf32, #tpu.memory_space<vmem>>, vector<1x1x32xf32>,
    return
  }
  func.func @transform_0(%arg0: i32) -> (i32, i32) {
    %c0_i32 = arith.constant 0 : i32
    %c0_i32_0 = arith.constant 0 : i32
    return %arg0, %c0_i32 : i32, i32
  }
  func.func @transform_1(%arg0: i32) -> (i32, i32) {
    %c0_i32 = arith.constant 0 : i32
    %c0_i32_0 = arith.constant 0 : i32
    return %arg0, %c0_i32 : i32, i32
  }
  func.func @transform_2(%arg0: i32) -> i32 {
    %c0_i32 = arith.constant 0 : i32
    %c0_i32_0 = arith.constant 0 : i32
    return %c0_i32 : i32
  }
  func.func @transform_3(%arg0: i32) -> (i32, i32) {
    %c0_i32 = arith.constant 0 : i32
    %c0_i32_0 = arith.constant 0 : i32
    %c0_i32_1 = arith.constant 0 : i32
    return %c0_i32, %c0_i32_0 : i32, i32
  }
  func.func @transform_4(%arg0: i32) -> (i32, i32) {
    %c0_i32 = arith.constant 0 : i32
    %c0_i32_0 = arith.constant 0 : i32
    %c0_i32_1 = arith.constant 0 : i32
    return %c0_i32, %c0_i32_0 : i32, i32
  }
  func.func @transform_5(%arg0: i32) -> (i32, i32) {
    %c0_i32 = arith.constant 0 : i32
    %c0_i32_0 = arith.constant 0 : i32
    return %arg0, %c0_i32 : i32, i32
  }
  func.func @transform_6(%arg0: i32) -> (i32, i32, i32) {
    %c0_i32 = arith.constant 0 : i32
    %c0_i32_0 = arith.constant 0 : i32
    %c0_i32_1 = arith.constant 0 : i32
    return %arg0, %c0_i32, %c0_i32_0 : i32, i32, i32
  }
}

</mosaic_0001>

<bundles_post_ra>
// kernel: node_update_forward.1
= control target key start
LH: loop header
LB: loop body
LE: loop exit
PB: predicated region body
PF: predicated region fallthrough
CT: control target
= control target key end

     0   :  { %12 = vsyncpa [#allocation3], 0  ;;  %s1195_s21 = smov 0   ;;  %s1735_s0 = inlined_call_operand.vmem [shape: f32[1024,32], index: 0, kind: input, shape index: {}]   ;;  %s1736_s1 = inlined_call_operand.vmem [shape: f32[1024,256], index: 1, kind: input, shape index: {}]   ;;  %s1737_s2 = inlined_call_operand.vmem [shape: f32[2], index: 2, kind: input, shape index: {}]   ;;  %s1738_s3 = inlined_call_operand.vmem [shape: f32[32,32], index: 3, kind: input, shape index: {}]   ;;  %s1739_s4 = inlined_call_operand.vmem [shape: f32[128,32], index: 4, kind: input, shape index: {}]   ;;  %s1740_s5 = inlined_call_operand.vmem [shape: f32[1024,32], index: 5, kind: output, shape index: {0}]   ;;  %s1741_s6 = inlined_call_operand.vmem [shape: f32[8,2,32], index: 6, kind: output, shape index: {1}]  }
   0x1 LB: > { %s1201_s22 = sadd.s32 4294967295, %s1157_s21   ;;  %p1041_p0 = scmp.ge.s32.totalorder %s1157_s21, 1  ;;  %s1157_s21 = sphi %s1195_s21, %s18_s21  }
   0x2   : > { %p190_p1 = scmp.lt.s32.totalorder %s1157_s21, 9  ;;  %s202_s25 = sshll.u32 %s1737_s2, 4  ;;  %s203_s25 = int_to_ptr.vmem [resolvable:$true] %s202_s25 }
   0x3   : > { %p1119_p3 = scmp.eq.s32.totalorder %s1201_s22, 0  ;;  %s1159_s26 = smov [#allocation2]  }
   0x4   : > { %p191_p2 = pnand %p1041_p0, %p190_p1 }
   0x6   : > { %p1115_p4 = pneg %p191_p2  ;;  %240 = sbr.rel (%p191_p2) target bundleno = 456 (0x1c8), region = 40 }
   0x8   : > { %p1116_p5 = pnand %p1119_p3, %p1115_p4 }
   0xa   : > { %1118 = dma.vmem_to_smem (!%p1116_p5), %s203_s25, 16, %s1159_s26, [#allocation3]  }
   0xb   : > { %1152 = dma.done.wait (%p1119_p3), [#allocation3], 16  }
   0xc   : > { %1154 = vsyncadd (%p1119_p3), [#allocation3], 4294967280 }
   0xd   : > { %247 = sfence }
   0xe   : > { %v320_v0 = vld [vmem:[%s1739_s4 + $0x78] sm:$0xff]  ;;  %v319_v1 = vld [vmem:[%s1739_s4 + $0x70] sm:$0xff]  ;;  %v318_v2 = vld [vmem:[%s1739_s4 + $0x68] sm:$0xff]  ;;  %s1046_s13 = sshll.u32 %s1201_s22, 4  ;;  %s450_s29 = sld [smem:[#allocation2]]  ;;  %vm554_vm1 = vcmask 261120  }
   0xf   : > { %369 = vmatpush.msra.mxu0 %v320_v0  ;;  %1075 = vmatpush.msra.mxu2 %v320_v0  ;;  %v317_v3 = vld [vmem:[%s1739_s4 + $0x60] sm:$0xff]  ;;  %v316_v4 = vld [vmem:[%s1739_s4 + $0x58] sm:$0xff]  ;;  %v315_v5 = vld [vmem:[%s1739_s4 + $0x50] sm:$0xff]  ;;  %p283_p6 = scmp.lt.s32.totalorder %s1046_s13, 127  ;;  %s1054_s7 = sld [smem:[#allocation2 + $0x1]] }
  0x10   : > { %1076 = vmatpush.msra.mxu3 %v320_v0  ;;  %v314_v6 = vld [vmem:[%s1739_s4 + $0x48] sm:$0xff]  ;;  %v313_v7 = vld [vmem:[%s1739_s4 + $0x40] sm:$0xff]  ;;  %v312_v8 = vld [vmem:[%s1739_s4 + $0x38] sm:$0xff]  ;;  %p301_p8 = scmp.lt.s32.totalorder %s1201_s22, 7 }
  0x11   : > { %370 = vmatpush.msra.mxu0 %v319_v1  ;;  %1077 = vmatpush.msra.mxu2 %v319_v1  ;;  %s1755_s13 = smov (!%p283_p6, %s1046_s13), 127  ;;  %v311_v9 = vld [vmem:[%s1739_s4 + $0x30] sm:$0xff]  ;;  %v310_v10 = vld [vmem:[%s1739_s4 + $0x28] sm:$0xff]  ;;  %v309_v11 = vld [vmem:[%s1739_s4 + $0x20] sm:$0xff] }
  0x12   : > { %1078 = vmatpush.msra.mxu3 %v319_v1  ;;  %s1074_s28 = sshll.u32 %s1755_s13, 4  ;;  %v308_v12 = vld [vmem:[%s1739_s4 + $0x18] sm:$0xff]  ;;  %v307_v13 = vld [vmem:[%s1739_s4 + $0x10] sm:$0xff]  ;;  %v306_v18 = vld [vmem:[%s1739_s4 + $0x8] sm:$0xff]  ;;  %s1047_s30 = sshll.u32 %s1755_s13, 3 }
  0x13   : > { %371 = vmatpush.msra.mxu0 %v318_v2  ;;  %1079 = vmatpush.msra.mxu2 %v318_v2  ;;  %s1252_s9 = scalar_lea.vmem %s1736_s1, %s1074_s28  ;;  %v305_v19 = vld [vmem:[%s1739_s4] sm:$0xff]  ;;  %v553_v0 = vld [vmem:[%s1738_s3 + $0x18] sm:$0xff]  ;;  %v552_v1 = vld [vmem:[%s1738_s3 + $0x10] sm:$0xff]  ;;  %s1316_s10 = scalar_lea.vmem %s1735_s0, %s1047_s30 }
  0x14   : > { %1080 = vmatpush.msra.mxu3 %v318_v2  ;;  %v321_v14 = vld [vmem:[%s1252_s9] sm:$0xff]  ;;  %v337_v15 = vld [vmem:[%s1252_s9 + $0x8] sm:$0xff]  ;;  %v328_v16 = vld [vmem:[%s1252_s9 + $0x70] sm:$0xff]  ;;  %615 = vmatpush.msra.mxu1 %v553_v0  ;;  %s1400_s14 = scalar_lea.vmem %s1740_s5, %s1047_s30  ;;  %s1071_s13 = sshll.u32 %s1201_s22, 7 }
  0x15   : > { %372 = vmatpush.msra.mxu0 %v317_v3  ;;  %1081 = vmatpush.msra.mxu2 %v317_v3  ;;  %v344_v17 = vld [vmem:[%s1252_s9 + $0x78] sm:$0xff]  ;;  %v353_v20 = vadd.f32 %v337_v15, %v321_v14  ;;  %v322_v22 = vld [vmem:[%s1252_s9 + $0x10] sm:$0xff]  ;;  %v329_v24 = vld [vmem:[%s1252_s9 + $0x80] sm:$0xff]  ;;  %s735_s15 = ssub.s32 1024, %s1071_s13  ;;  %s1759_s22 = smov (!%p301_p8, %s1201_s22), 7 }
  0x16   : > { %1082 = vmatpush.msra.mxu3 %v317_v3  ;;  %v360_v21 = vadd.f32 %v344_v17, %v328_v16  ;;  %v338_v23 = vld [vmem:[%s1252_s9 + $0x18] sm:$0xff]  ;;  %v345_v25 = vld [vmem:[%s1252_s9 + $0x88] sm:$0xff]  ;;  %v323_v28 = vld [vmem:[%s1252_s9 + $0x20] sm:$0xff]  ;;  %616 = vmatpush.msra.mxu1 %v552_v1  ;;  %p736_p7 = scmp.lt.s32.totalorder %s735_s15, 128  ;;  %s1053_s17 = sshll.u32 %s1759_s22, 1 }
  0x17   : > { %373 = vmatpush.msra.mxu0 %v316_v4  ;;  %1083 = vmatpush.msra.mxu2 %v316_v4  ;;  %v354_v26 = vadd.f32 %v338_v23, %v322_v22  ;;  %v361_v27 = vadd.f32 %v345_v25, %v329_v24  ;;  %v339_v29 = vld [vmem:[%s1252_s9 + $0x28] sm:$0xff]  ;;  %v330_v30 = vld [vmem:[%s1252_s9 + $0x90] sm:$0xff]  ;;  %v346_v31 = vld [vmem:[%s1252_s9 + $0x98] sm:$0xff]  ;;  %s1644_s20 = scalar_lea.vmem %s1741_s6, %s1053_s17 }
  0x18   : > { %1084 = vmatpush.msra.mxu3 %v316_v4  ;;  %v355_v32 = vadd.f32 %v339_v29, %v323_v28  ;;  %v362_v33 = vadd.f32 %v346_v31, %v330_v30  ;;  %v324_v34 = vld [vmem:[%s1252_s9 + $0x30] sm:$0xff]  ;;  %v340_v35 = vld [vmem:[%s1252_s9 + $0x38] sm:$0xff]  ;;  %v331_v36 = vld [vmem:[%s1252_s9 + $0xa0] sm:$0xff]  ;;  %s1757_s15 = smov (!%p736_p7, %s735_s15), 128 }
  0x19   : > { %374 = vmatpush.msra.mxu0 %v315_v5  ;;  %1085 = vmatpush.msra.mxu2 %v315_v5  ;;  %v347_v37 = vld [vmem:[%s1252_s9 + $0xa8] sm:$0xff]  ;;  %v356_v38 = vadd.f32 %v340_v35, %v324_v34  ;;  %v325_v40 = vld [vmem:[%s1252_s9 + $0x40] sm:$0xff]  ;;  %v336_v41 = vld [vmem:[%s1252_s9 + $0xf0] sm:$0xff]  ;;  %s738_s16 = scvt.s32.f32 %s1757_s15 }
  0x1a   : > { %1086 = vmatpush.msra.mxu3 %v315_v5  ;;  %v363_v39 = vadd.f32 %v347_v37, %v331_v36  ;;  %v352_v42 = vld [vmem:[%s1252_s9 + $0xf8] sm:$0xff]  ;;  %v341_v43 = vld [vmem:[%s1252_s9 + $0x48] sm:$0xff]  ;;  %v332_v44 = vld [vmem:[%s1252_s9 + $0xb0] sm:$0xff]  ;;  %v1319_v5 = vstv %s450_s29 }
  0x1b   : > { %375 = vmatpush.msra.mxu0 %v314_v6  ;;  %1087 = vmatpush.msra.mxu2 %v314_v6  ;;  %v348_v45 = vld [vmem:[%s1252_s9 + $0xb8] sm:$0xff]  ;;  %v368_v46 = vadd.f32 %v352_v42, %v336_v41  ;;  %v357_v47 = vadd.f32 %v341_v43, %v325_v40  ;;  %v326_v49 = vld [vmem:[%s1252_s9 + $0x50] sm:$0xff]  ;;  %v333_v51 = vld [vmem:[%s1252_s9 + $0xc0] sm:$0xff] }
  0x1c   : > { %1088 = vmatpush.msra.mxu3 %v314_v6  ;;  %v364_v48 = vadd.f32 %v348_v45, %v332_v44  ;;  %v342_v50 = vld [vmem:[%s1252_s9 + $0x58] sm:$0xff]  ;;  %v349_v52 = vld [vmem:[%s1252_s9 + $0xc8] sm:$0xff]  ;;  %v327_v55 = vld [vmem:[%s1252_s9 + $0x60] sm:$0xff]  ;;  %v1321_v6 = vstv %s1054_s7 }
  0x1d   : > { %376 = vmatpush.msra.mxu0 %v313_v7  ;;  %1089 = vmatpush.msra.mxu2 %v313_v7  ;;  %v358_v53 = vadd.f32 %v342_v50, %v326_v49  ;;  %v365_v54 = vadd.f32 %v349_v52, %v333_v51  ;;  %v343_v56 = vld [vmem:[%s1252_s9 + $0x68] sm:$0xff]  ;;  %v334_v57 = vld [vmem:[%s1252_s9 + $0xd0] sm:$0xff]  ;;  %v350_v58 = vld [vmem:[%s1252_s9 + $0xd8] sm:$0xff] }
  0x1e   : > { %1090 = vmatpush.msra.mxu3 %v313_v7  ;;  %v359_v59 = vadd.f32 %v343_v56, %v327_v55  ;;  %v366_v60 = vadd.f32 %v350_v58, %v334_v57  ;;  %v335_v61 = vld [vmem:[%s1252_s9 + $0xe0] sm:$0xff]  ;;  %v351_v62 = vld [vmem:[%s1252_s9 + $0xe8] sm:$0xff]  ;;  %v444_v34 = vld [vmem:[%s1316_s10 + $0x50] sm:$0xff] }
  0x1f   : > { %377 = vmatpush.msra.mxu0 %v312_v8  ;;  %1091 = vmatpush.msra.mxu2 %v312_v8  ;;  %v367_v63 = vadd.f32 %v351_v62, %v335_v61  ;;  %v551_v2 = vld [vmem:[%s1738_s3 + $0x8] sm:$0xff]  ;;  %v550_v3 = vld [vmem:[%s1738_s3] sm:$0xff] }
  0x20   : > { %1092 = vmatpush.msra.mxu3 %v312_v8  ;;  %617 = vmatpush.msra.mxu1 %v551_v2  ;;  %v434_v4 = vld [vmem:[%s1316_s10] sm:$0xff]  ;;  %v439_v49 = vld [vmem:[%s1316_s10 + $0x28] sm:$0xff] }
  0x21   : > { %378 = vmatpush.msra.mxu0 %v311_v9  ;;  %1093 = vmatpush.msra.mxu2 %v311_v9  ;;  %v452_v7 = vmul.f32 %v1319_v5, %v434_v4  ;;  %v438_v36 = vld [vmem:[%s1316_s10 + $0x20] sm:$0xff]  ;;  %v441_v4 = vld [vmem:[%s1316_s10 + $0x38] sm:$0xff] }
  0x22   : > { %1094 = vmatpush.msra.mxu3 %v311_v9  ;;  %618 = vmatpush.msra.mxu1 %v550_v3  ;;  %v456_v40 = vmul.f32 %v1319_v5, %v438_v36 }
  0x23   : > { %379 = vmatpush.msra.mxu0 %v310_v10  ;;  %1095 = vmatpush.msra.mxu2 %v310_v10 }
  0x24   : > { %1096 = vmatpush.msra.mxu3 %v310_v10 }
  0x25   : > { %380 = vmatpush.msra.mxu0 %v309_v11  ;;  %1097 = vmatpush.msra.mxu2 %v309_v11 }
  0x26   : > { %1098 = vmatpush.msra.mxu3 %v309_v11  ;;  %v435_v11 = vld [vmem:[%s1316_s10 + $0x8] sm:$0xff] }
  0x27   : > { %381 = vmatpush.msra.mxu0 %v308_v12  ;;  %1099 = vmatpush.msra.mxu2 %v308_v12  ;;  %v453_v14 = vmul.f32 %v1319_v5, %v435_v11 }
  0x28   : > { %1100 = vmatpush.msra.mxu3 %v308_v12 }
  0x29   : > { %382 = vmatpush.msra.mxu0 %v307_v13  ;;  %1101 = vmatpush.msra.mxu2 %v307_v13 }
  0x2a   : > { %1102 = vmatpush.msra.mxu3 %v307_v13 }
  0x2b   : > { %383 = vmatpush.msra.mxu0 %v306_v18  ;;  %1103 = vmatpush.msra.mxu2 %v306_v18 }
  0x2c   : > { %1104 = vmatpush.msra.mxu3 %v306_v18 }
  0x2d   : > { %384 = vmatpush.msra.mxu0 %v305_v19  ;;  %1105 = vmatpush.msra.mxu2 %v305_v19 }
  0x2e   : > { %385 = vmatmul.f32.vlgmr.msra.gmra.mxu0 %v353_v20  ;;  %406 = vmatmul.f32.vlgmr.msra.gmra.mxu2 %v360_v21 }
  0x2f   : > { %1106 = vmatpush.msra.mxu3 %v305_v19  ;;  %v436_v19 = vld [vmem:[%s1316_s10 + $0x10] sm:$0xff] }
  0x30   : > { %430 = vmatmul.f32.vlgmr.msra.gmra.mxu3 %v368_v46  ;;  %v454_v22 = vmul.f32 %v1319_v5, %v436_v19  ;;  %v445_v46 = vld [vmem:[%s1316_s10 + $0x58] sm:$0xff] }
  0x31   : > { %1107 = vmatpush.msrb.mxu3 %v553_v0  ;;  %v463_v51 = vmul.f32 %v1319_v5, %v445_v46 }
  0x33   : > { %1108 = vmatpush.msrb.mxu3 %v552_v1 }
  0x35   : > { %1109 = vmatpush.msrb.mxu3 %v551_v2 }
  0x36   : > { %388 = vmatmul.f32.gmra.mxu0 %v354_v26  ;;  %409 = vmatmul.f32.gmra.mxu2 %v361_v27  ;;  %v437_v27 = vld [vmem:[%s1316_s10 + $0x18] sm:$0xff] }
  0x37   : > { %1110 = vmatpush.msrb.mxu3 %v550_v3  ;;  %v455_v30 = vmul.f32 %v1319_v5, %v437_v27 }
  0x3e   : > { %391 = vmatmul.f32.gmra.mxu0 %v355_v32  ;;  %412 = vmatmul.f32.gmra.mxu2 %v362_v33 }
  0x46   : > { %394 = vmatmul.f32.gmra.mxu0 %v356_v38  ;;  %415 = vmatmul.f32.gmra.mxu2 %v363_v39  ;;  %v462_v38 = vmul.f32 %v1319_v5, %v444_v34 }
  0x4e   : > { %397 = vmatmul.f32.gmra.mxu0 %v357_v47  ;;  %418 = vmatmul.f32.gmra.mxu2 %v364_v48 }
  0x56   : > { %400 = vmatmul.f32.gmra.mxu0 %v358_v53  ;;  %421 = vmatmul.f32.gmra.mxu2 %v365_v54  ;;  %v457_v54 = vmul.f32 %v1319_v5, %v439_v49 }
  0x5e   : > { %403 = vmatmul.f32.gmra.mxu0 %v359_v59  ;;  %424 = vmatmul.f32.gmra.mxu2 %v366_v60  ;;  %v446_v60 = vld [vmem:[%s1316_s10 + $0x60] sm:$0xff] }
  0x5f   : > { %v464_v1 = vmul.f32 %v1319_v5, %v446_v60 }
  0x66   : > { %427 = vmatmul.f32.gmra.mxu2 %v367_v63  ;;  %v440_v63 = vld [vmem:[%s1316_s10 + $0x30] sm:$0xff] }
  0xab   : > { %v386_v8 = vpop.f32.mrf.mxu0 }
  0xac   : > { %v470_v9 = vmul.f32 %v1321_v6, %v386_v8 }
  0xae   : > { %v486_v10 = vadd.f32 %v470_v9, %v452_v7  ;;  %v458_v7 = vmul.f32 %v1319_v5, %v440_v63 }
  0xb0   : > { %vm502_vm0 = vcmp.ge.f32.partialorder %v486_v10, 0.0  ;;  %v518_v12 = vmul.f32 0.01, %v486_v10 }
  0xb1   : > { %v1326_v13 = vpop.f32.mrf.mxu2 }
  0xb2   : > { %v534_v15 = vsel %vm502_vm0, %v486_v10, %v518_v12 }
  0xb3   : > { %v389_v16 = vpop.f32.mrf.mxu0  ;;  %1055 = vmatmul.msk.f32.vlgmr.msra.gmra.mxu1 %vm554_vm1, %v534_v15  ;;  %v447_v15 = vld [vmem:[%s1316_s10 + $0x68] sm:$0xff]  ;;  %v431_v34 = vpop.f32.mrf.mxu3 }
  0xb4   : > { %v471_v17 = vmul.f32 %v1321_v6, %v389_v16  ;;  %v477_v16 = vmul.f32 %v1321_v6, %v1326_v13 }
  0xb6   : > { %v487_v18 = vadd.f32 %v471_v17, %v453_v14  ;;  %v459_v14 = vmul.f32 %v1319_v5, %v441_v4 }
  0xb8   : > { %vm503_vm2 = vcmp.ge.f32.partialorder %v487_v18, 0.0  ;;  %v519_v20 = vmul.f32 0.01, %v487_v18 }
  0xb9   : > { %v1332_v21 = vpop.f32.mrf.mxu2 }
  0xba   : > { %v535_v23 = vsel %vm503_vm2, %v487_v18, %v519_v20  ;;  %v465_v20 = vmul.f32 %v1319_v5, %v447_v15 }
  0xbb   : > { %v392_v24 = vpop.f32.mrf.mxu0  ;;  %1056 = vmatmul.msk.f32.gmra.mxu1 %vm554_vm1, %v535_v23 }
  0xbc   : > { %v472_v25 = vmul.f32 %v1321_v6, %v392_v24  ;;  %v493_v24 = vadd.f32 %v477_v16, %v459_v14 }
  0xbe   : > { %v488_v26 = vadd.f32 %v472_v25, %v454_v22  ;;  %v442_v25 = vld [vmem:[%s1316_s10 + $0x40] sm:$0xff]  ;;  %vm509_vm12 = vcmp.ge.f32.partialorder %v493_v24, 0.0 }
  0xc0   : > { %vm504_vm3 = vcmp.ge.f32.partialorder %v488_v26, 0.0  ;;  %v520_v28 = vmul.f32 0.01, %v488_v26 }
  0xc1   : > { %v1338_v29 = vpop.f32.mrf.mxu2 }
  0xc2   : > { %v536_v31 = vsel %vm504_vm3, %v488_v26, %v520_v28  ;;  %v460_v28 = vmul.f32 %v1319_v5, %v442_v25 }
  0xc3   : > { %v395_v32 = vpop.f32.mrf.mxu0  ;;  %1057 = vmatmul.msk.f32.gmra.mxu1 %vm554_vm1, %v536_v31  ;;  %v448_v31 = vld [vmem:[%s1316_s10 + $0x70] sm:$0xff] }
  0xc4   : > { %v473_v33 = vmul.f32 %v1321_v6, %v395_v32  ;;  %v525_v32 = vmul.f32 0.01, %v493_v24  ;;  %v466_v36 = vmul.f32 %v1319_v5, %v448_v31 }
  0xc6   : > { %v489_v35 = vadd.f32 %v473_v33, %v455_v30  ;;  %v478_v30 = vmul.f32 %v1321_v6, %v1332_v21 }
  0xc8   : > { %vm505_vm4 = vcmp.ge.f32.partialorder %v489_v35, 0.0  ;;  %v521_v37 = vmul.f32 0.01, %v489_v35 }
  0xc9   : > { %v416_v39 = vpop.f32.mrf.mxu2 }
  0xca   : > { %v537_v41 = vsel %vm505_vm4, %v489_v35, %v521_v37  ;;  %v480_v42 = vmul.f32 %v1321_v6, %v416_v39  ;;  %v449_v35 = vld [vmem:[%s1316_s10 + $0x78] sm:$0xff] }
  0xcb   : > { %v398_v43 = vpop.f32.mrf.mxu0  ;;  %1058 = vmatmul.msk.f32.gmra.mxu1 %vm554_vm1, %v537_v41  ;;  %v541_v41 = vsel %vm509_vm12, %v493_v24, %v525_v32  ;;  %v467_v21 = vmul.f32 %v1319_v5, %v449_v35 }
  0xcc   : > { %v474_v44 = vmul.f32 %v1321_v6, %v398_v43  ;;  %v496_v45 = vadd.f32 %v480_v42, %v462_v38  ;;  %v494_v38 = vadd.f32 %v478_v30, %v460_v28  ;;  %v485_v43 = vmul.f32 %v1321_v6, %v431_v34 }
  0xce   : > { %v490_v47 = vadd.f32 %v474_v44, %v456_v40  ;;  %v528_v48 = vmul.f32 0.01, %v496_v45  ;;  %vm512_vm5 = vcmp.ge.f32.partialorder %v496_v45, 0.0  ;;  %v443_v40 = vld [vmem:[%s1316_s10 + $0x48] sm:$0xff]  ;;  %v526_v46 = vmul.f32 0.01, %v494_v38 }
  0xcf   : > { %vm510_vm14 = vcmp.ge.f32.partialorder %v494_v38, 0.0 }
  0xd0   : > { %vm506_vm6 = vcmp.ge.f32.partialorder %v490_v47, 0.0  ;;  %v522_v50 = vmul.f32 0.01, %v490_v47  ;;  %v544_v52 = vsel %vm512_vm5, %v496_v45, %v528_v48  ;;  %v461_v45 = vmul.f32 %v1319_v5, %v443_v40 }
  0xd1   : > { %v419_v53 = vpop.f32.mrf.mxu2  ;;  %1065 = vmatmul.msk.f32.vlgmr.msrb.gmra.mxu3 %vm554_vm1, %v544_v52  ;;  %v501_v48 = vadd.f32 %v485_v43, %v467_v21  ;;  %v542_v52 = vsel %vm510_vm14, %v494_v38, %v526_v46 }
  0xd2   : > { %v538_v55 = vsel %vm506_vm6, %v490_v47, %v522_v50  ;;  %v481_v56 = vmul.f32 %v1321_v6, %v419_v53  ;;  %v479_v47 = vmul.f32 %v1321_v6, %v1338_v29 }
  0xd3   : > { %v401_v57 = vpop.f32.mrf.mxu0  ;;  %1059 = vmatmul.msk.f32.gmra.mxu1 %vm554_vm1, %v538_v55  ;;  %v533_v53 = vmul.f32 0.01, %v501_v48  ;;  %vm517_vm15 = vcmp.ge.f32.partialorder %v501_v48, 0.0 }
  0xd4   : > { %v475_v58 = vmul.f32 %v1321_v6, %v401_v57  ;;  %v497_v59 = vadd.f32 %v481_v56, %v463_v51  ;;  %v495_v51 = vadd.f32 %v479_v47, %v461_v45 }
  0xd5   : > { %v549_v5 = vsel %vm517_vm15, %v501_v48, %v533_v53  ;;  %v1562_v53 = vstv %s738_s16 }
  0xd6   : > { %v491_v61 = vadd.f32 %v475_v58, %v457_v54  ;;  %vm513_vm7 = vcmp.ge.f32.partialorder %v497_v59, 0.0  ;;  %v529_v62 = vmul.f32 0.01, %v497_v59  ;;  %v527_v54 = vmul.f32 0.01, %v495_v51 }
  0xd7   : > { %vm511_vm0 = vcmp.ge.f32.partialorder %v495_v51, 0.0  ;;  %1130 = vrcp.f32 %v1562_v53 }
  0xd8   : > { %vm507_vm8 = vcmp.ge.f32.partialorder %v491_v61, 0.0  ;;  %v523_v0 = vmul.f32 0.01, %v491_v61  ;;  %v545_v2 = vsel %vm513_vm7, %v497_v59, %v529_v62  ;;  %v684_v59 = vlaneseq }
  0xd9   : > { %v422_v3 = vpop.f32.mrf.mxu2  ;;  %1066 = vmatmul.msk.f32.gmra.mxu3 %vm554_vm1, %v545_v2  ;;  %v1444_v2 = vstv %s1071_s13 }
  0xda   : > { %v539_v8 = vsel %vm507_vm8, %v491_v61, %v523_v0  ;;  %v482_v9 = vmul.f32 %v1321_v6, %v422_v3  ;;  %v1432_v61 = vshrl.u32 %v684_v59, 7 }
  0xdb   : > { %v404_v10 = vpop.f32.mrf.mxu0  ;;  %1060 = vmatmul.msk.f32.gmra.mxu1 %vm554_vm1, %v539_v8 }
  0xdc   : > { %v476_v11 = vmul.f32 %v1321_v6, %v404_v10  ;;  %v498_v12 = vadd.f32 %v482_v9, %v464_v1  ;;  %v686_v63 = vadd.s32 8, %v1432_v61  ;;  %v687_v0 = vadd.s32 16, %v1432_v61 }
  0xdd   : > { %v688_v4 = vadd.s32 24, %v1432_v61  ;;  %v689_v9 = vadd.s32 32, %v1432_v61  ;;  %v691_v15 = vadd.s32 48, %v1432_v61  ;;  %v695_v38 = vadd.s32 80, %v1432_v61 }
  0xde   : > { %v492_v17 = vadd.f32 %v476_v11, %v458_v7  ;;  %vm514_vm9 = vcmp.ge.f32.partialorder %v498_v12, 0.0  ;;  %v530_v18 = vmul.f32 0.01, %v498_v12  ;;  %v1450_v3 = vadd.s32 %v1444_v2, %v686_v63 }
  0xdf   : > { %v1455_v7 = vadd.s32 %v1444_v2, %v1432_v61  ;;  %v1458_v8 = vadd.s32 %v1444_v2, %v687_v0  ;;  %v1468_v11 = vadd.s32 %v1444_v2, %v688_v4  ;;  %v1474_v14 = vadd.s32 %v1444_v2, %v689_v9 }
  0xe0   : > { %vm508_vm10 = vcmp.ge.f32.partialorder %v492_v17, 0.0  ;;  %v524_v19 = vmul.f32 0.01, %v492_v17  ;;  %v546_v22 = vsel %vm514_vm9, %v498_v12, %v530_v18  ;;  %vm720_vm2 = vcmp.lt.s32.totalorder %v1450_v3, 1024 }
  0xe1   : > { %v425_v23 = vpop.f32.mrf.mxu2  ;;  %1067 = vmatmul.msk.f32.gmra.mxu3 %vm554_vm1, %v546_v22  ;;  %v690_v12 = vadd.s32 40, %v1432_v61  ;;  %vm719_vm3 = vcmp.lt.s32.totalorder %v1455_v7, 1024  ;;  %vm721_vm4 = vcmp.lt.s32.totalorder %v1458_v8, 1024  ;;  %vm722_vm5 = vcmp.lt.s32.totalorder %v1468_v11, 1024 }
  0xe2   : > { %v540_v26 = vsel %vm508_vm10, %v492_v17, %v524_v19  ;;  %v483_v27 = vmul.f32 %v1321_v6, %v425_v23  ;;  %v692_v19 = vadd.s32 56, %v1432_v61  ;;  %vm723_vm6 = vcmp.lt.s32.totalorder %v1474_v14, 1024 }
  0xe3   : > { %1061 = vmatmul.msk.f32.gmra.mxu1 %vm554_vm1, %v540_v26  ;;  %v1487_v18 = vadd.s32 %v1444_v2, %v690_v12  ;;  %v1499_v24 = vadd.s32 %v1444_v2, %v691_v15  ;;  %v693_v26 = vadd.s32 64, %v1432_v61  ;;  %v694_v40 = vadd.s32 72, %v1432_v61 }
  0xe4   : > { %v499_v13 = vadd.f32 %v483_v27, %v465_v20  ;;  %v1514_v30 = vadd.s32 %v1444_v2, %v692_v19  ;;  %v696_v43 = vadd.s32 88, %v1432_v61  ;;  %v1546_v46 = vadd.s32 %v1444_v2, %v695_v38 }
  0xe5   : > { %vm724_vm7 = vcmp.lt.s32.totalorder %v1487_v18, 1024  ;;  %vm725_vm8 = vcmp.lt.s32.totalorder %v1499_v24, 1024  ;;  %v1523_v34 = vadd.s32 %v1444_v2, %v693_v26  ;;  %v697_v48 = vadd.s32 96, %v1432_v61 }
  0xe6   : > { %vm515_vm11 = vcmp.ge.f32.partialorder %v499_v13, 0.0  ;;  %v531_v33 = vmul.f32 0.01, %v499_v13  ;;  %vm726_vm9 = vcmp.lt.s32.totalorder %v1514_v30, 1024  ;;  %v699_v9 = vadd.s32 112, %v1432_v61 }
  0xe7   : > { %vm727_vm10 = vcmp.lt.s32.totalorder %v1523_v34, 1024  ;;  %v1573_v0 = vadd.s32 %v1444_v2, %v697_v48  ;;  %v700_v19 = vadd.s32 120, %v1432_v61 }
  0xe8   : > { %v547_v37 = vsel %vm515_vm11, %v499_v13, %v531_v33  ;;  %vm1747_vm11 = vcmp.lt.s32.totalorder %v1546_v46, 1024 }
  0xe9   : > { %v428_v39 = vpop.f32.mrf.mxu2  ;;  %1068 = vmatmul.msk.f32.gmra.mxu3 %vm554_vm1, %v547_v37  ;;  %vm1742_vm14 = vcmp.lt.s32.totalorder %v1573_v0, 1024 }
  0xea   : > { %v484_v42 = vmul.f32 %v1321_v6, %v428_v39  ;;  %v543_v6 = vsel %vm511_vm0, %v495_v51, %v527_v54  ;;  %v1565_v54 = vadd.s32 %v1444_v2, %v696_v43 }
  0xeb   : > { %1062 = vmatmul.msk.f32.gmra.mxu1 %vm554_vm1, %v541_v41 }
  0xec   : > { %v500_v44 = vadd.f32 %v484_v42, %v466_v36 }
  0xee   : > { %vm516_vm13 = vcmp.ge.f32.partialorder %v500_v44, 0.0  ;;  %v532_v49 = vmul.f32 0.01, %v500_v44 }
  0xf0   : > { %v548_v50 = vsel %vm516_vm13, %v500_v44, %v532_v49  ;;  %vm1746_vm13 = vcmp.lt.s32.totalorder %v1565_v54, 1024 }
  0xf1   : > { %1069 = vmatmul.msk.f32.gmra.mxu3 %vm554_vm1, %v548_v50  ;;  %v1557_v50 = vadd.s32 %v1444_v2, %v694_v40 }
  0xf3   : > { %1063 = vmatmul.msk.f32.gmra.mxu1 %vm554_vm1, %v542_v52  ;;  %vm728_vm12 = vcmp.lt.s32.totalorder %v1557_v50, 1024 }
  0xf9   : > { %1070 = vmatmul.msk.f32.gmra.mxu3 %vm554_vm1, %v549_v5 }
  0xfb   : > { %1064 = vmatmul.msk.f32.gmra.mxu1 %vm554_vm1, %v543_v6  ;;  %v698_v6 = vadd.s32 104, %v1432_v61 }
  0xfd   : > { %v1584_v15 = vadd.s32 %v1444_v2, %v698_v6 }
  0xff   : > { %vm1744_vm15 = vcmp.lt.s32.totalorder %v1584_v15, 1024 }
 0x130   : > { %v1402_v29 = vpop.f32.mrf.mxu1 }
 0x131   : > { %668 = vst.msk [vmem:[%s1400_s14] sm:$0xff] %vm554_vm1, %v1402_v29  ;;  %v771_v20 = vsel %vm719_vm3, %v1402_v29, 0.0 }
 0x132   : > { %v787_v13 = vsel %vm554_vm1, %v771_v20, 0.0 }
 0x138   : > { %v1407_v55 = vpop.f32.mrf.mxu1 }
 0x139   : > { %669 = vst.msk [vmem:[%s1400_s14 + $0x8] sm:$0xff] %vm554_vm1, %v1407_v55  ;;  %v772_v17 = vsel %vm720_vm2, %v1407_v55, 0.0 }
 0x13a   : > { %v788_v23 = vsel %vm554_vm1, %v772_v17, 0.0 }
 0x13b   : > { %v789_v31 = vadd.f32 %v788_v23, %v787_v13 }
 0x140   : > { %v1412_v56 = vpop.f32.mrf.mxu1 }
 0x141   : > { %670 = vst.msk [vmem:[%s1400_s14 + $0x10] sm:$0xff] %vm554_vm1, %v1412_v56  ;;  %v773_v22 = vsel %vm721_vm4, %v1412_v56, 0.0 }
 0x142   : > { %v790_v28 = vsel %vm554_vm1, %v773_v22, 0.0 }
 0x143   : > { %v791_v36 = vadd.f32 %v790_v28, %v789_v31  ;;  %v1131_v28 = vpop.eup %1130 }
 0x148   : > { %v1417_v57 = vpop.f32.mrf.mxu1 }
 0x149   : > { %671 = vst.msk [vmem:[%s1400_s14 + $0x18] sm:$0xff] %vm554_vm1, %v1417_v57  ;;  %v774_v27 = vsel %vm722_vm5, %v1417_v57, 0.0 }
 0x14a   : > { %v792_v33 = vsel %vm554_vm1, %v774_v27, 0.0  ;;  %v1601_v27 = vadd.s32 %v1444_v2, %v699_v9 }
 0x14b   : > { %v793_v41 = vadd.f32 %v792_v33, %v791_v36  ;;  %v1611_v33 = vadd.s32 %v1444_v2, %v700_v19  ;;  %v826_v2 = vmul.f32 %v1131_v28, %v1562_v53  ;;  %v834_v19 = vand.u32 2147483647, %v1562_v53 }
 0x14c   : > { %vm1743_vm0 = vcmp.lt.s32.totalorder %v1601_v27, 1024 }
 0x14d   : > { %v827_v48 = vsub.f32 1.0, %v826_v2 }
 0x14f   : > { %v828_v6 = vmul.f32 %v1131_v28, %v827_v48 }
 0x150   : > { %v1422_v58 = vpop.f32.mrf.mxu1 }
 0x151   : > { %672 = vst.msk [vmem:[%s1400_s14 + $0x20] sm:$0xff] %vm554_vm1, %v1422_v58  ;;  %v775_v32 = vsel %vm723_vm6, %v1422_v58, 0.0 }
 0x152   : > { %v794_v39 = vsel %vm554_vm1, %v775_v32, 0.0 }
 0x153   : > { %v795_v45 = vadd.f32 %v794_v39, %v793_v41 }
 0x154   : > { %v1427_v60 = vpop.f32.mrf.mxu3 }
 0x155   : > { %678 = vst.msk [vmem:[%s1400_s14 + $0x50] sm:$0xff] %vm554_vm1, %v1427_v60  ;;  %v781_v20 = vsel %vm1747_vm11, %v1427_v60, 0.0  ;;  %vm925_vm11 = vcmask 253952  }
 0x156   : > { %v806_v31 = vsel %vm554_vm1, %v781_v20, 0.0 }
 0x158   : > { %v1434_v62 = vpop.f32.mrf.mxu1 }
 0x159   : > { %673 = vst.msk [vmem:[%s1400_s14 + $0x28] sm:$0xff] %vm554_vm1, %v1434_v62  ;;  %v776_v37 = vsel %vm724_vm7, %v1434_v62, 0.0 }
 0x15a   : > { %v796_v21 = vsel %vm554_vm1, %v776_v37, 0.0 }
 0x15b   : > { %v797_v51 = vadd.f32 %v796_v21, %v795_v45 }
 0x15c   : > { %v1442_v1 = vpop.f32.mrf.mxu3 }
 0x15d   : > { %679 = vst.msk [vmem:[%s1400_s14 + $0x58] sm:$0xff] %vm554_vm1, %v1442_v1  ;;  %v782_v61 = vsel %vm1746_vm13, %v1442_v1, 0.0  ;;  %vm835_vm13 = vcmp.eq.f32.partialorder %v834_v19, 8.507059e+37 }
 0x15e   : > { %v808_v38 = vsel %vm554_vm1, %v782_v61, 0.0 }
 0x160   : > { %v1461_v10 = vpop.f32.mrf.mxu1 }
 0x161   : > { %674 = vst.msk [vmem:[%s1400_s14 + $0x30] sm:$0xff] %vm554_vm1, %v1461_v10  ;;  %v777_v42 = vsel %vm725_vm8, %v1461_v10, 0.0 }
 0x162   : > { %v798_v49 = vsel %vm554_vm1, %v777_v42, 0.0 }
 0x163   : > { %v799_v63 = vadd.f32 %v798_v49, %v797_v51 }
 0x164   : > { %v1477_v16 = vpop.f32.mrf.mxu3 }
 0x165   : > { %680 = vst.msk [vmem:[%s1400_s14 + $0x60] sm:$0xff] %vm554_vm1, %v1477_v16  ;;  %v783_v36 = vsel %vm1742_vm14, %v1477_v16, 0.0  ;;  %vm1745_vm14 = vcmp.lt.s32.totalorder %v1611_v33, 1024 }
 0x166   : > { %v810_v41 = vsel %vm554_vm1, %v783_v36, 0.0 }
 0x168   : > { %v1501_v25 = vpop.f32.mrf.mxu1 }
 0x169   : > { %675 = vst.msk [vmem:[%s1400_s14 + $0x38] sm:$0xff] %vm554_vm1, %v1501_v25  ;;  %v778_v47 = vsel %vm726_vm9, %v1501_v25, 0.0 }
 0x16a   : > { %v800_v5 = vsel %vm554_vm1, %v778_v47, 0.0 }
 0x16b   : > { %v801_v12 = vadd.f32 %v800_v5, %v799_v63 }
 0x16c   : > { %v1525_v35 = vpop.f32.mrf.mxu3 }
 0x16d   : > { %681 = vst.msk [vmem:[%s1400_s14 + $0x68] sm:$0xff] %vm554_vm1, %v1525_v35  ;;  %v784_v39 = vsel %vm1744_vm15, %v1525_v35, 0.0  ;;  %vm831_vm15 = vweird.f32 %v1131_v28 }
 0x16e   : > { %v812_v43 = vsel %vm554_vm1, %v784_v39, 0.0 }
 0x170   : > { %v1542_v44 = vpop.f32.mrf.mxu1 }
 0x171   : > { %676 = vst.msk [vmem:[%s1400_s14 + $0x40] sm:$0xff] %vm554_vm1, %v1542_v44  ;;  %v779_v52 = vsel %vm727_vm10, %v1542_v44, 0.0 }
 0x172   : > { %v802_v4 = vsel %vm554_vm1, %v779_v52, 0.0 }
 0x173   : > { %v803_v22 = vadd.f32 %v802_v4, %v801_v12  ;;  %v836_v4 = vand.u32 2147483648, %v1562_v53  ;;  %v829_v12 = vadd.f32 %v1131_v28, %v828_v6 }
 0x174   : > { %v1569_v59 = vpop.f32.mrf.mxu3 }
 0x175   : > { %682 = vst.msk [vmem:[%s1400_s14 + $0x70] sm:$0xff] %vm554_vm1, %v1569_v59  ;;  %v785_v42 = vsel %vm1743_vm0, %v1569_v59, 0.0  ;;  %vm830_vm0 = vweird.f32 %v1562_v53 }
 0x176   : > { %v814_v49 = vsel %vm554_vm1, %v785_v42, 0.0 }
 0x178   : > { %v1586_v17 = vpop.f32.mrf.mxu1 }
 0x179   : > { %677 = vst.msk [vmem:[%s1400_s14 + $0x48] sm:$0xff] %vm554_vm1, %v1586_v17  ;;  %v780_v23 = vsel %vm728_vm12, %v1586_v17, 0.0 }
 0x17a   : > { %v804_v26 = vsel %vm554_vm1, %v780_v23, 0.0 }
 0x17b   : > { %v805_v13 = vadd.f32 %v804_v26, %v803_v22  ;;  %v837_v22 = vor.u32 1.1754944e-38, %v836_v4 }
 0x17c   : > { %v1608_v32 = vpop.f32.mrf.mxu3 }
 0x17d   : > { %v807_v37 = vadd.f32 %v806_v31, %v805_v13  ;;  %683 = vst.msk [vmem:[%s1400_s14 + $0x78] sm:$0xff] %vm554_vm1, %v1608_v32  ;;  %v786_v47 = vsel %vm1745_vm14, %v1608_v32, 0.0  ;;  %vm832_vm14 = vmor %vm830_vm0, %vm831_vm15 }
 0x17e   : > { %v816_v52 = vsel %vm554_vm1, %v786_v47, 0.0  ;;  %v833_v26 = vsel %vm832_vm14, %v1131_v28, %v829_v12 }
 0x17f   : > { %v809_v40 = vadd.f32 %v808_v38, %v807_v37  ;;  %v838_v13 = vsel %vm835_vm13, %v837_v22, %v833_v26 }
 0x181   : > { %v811_v21 = vadd.f32 %v810_v41, %v809_v40 }
 0x183   : > { %v813_v45 = vadd.f32 %v812_v43, %v811_v21 }
 0x185   : > { %v815_v51 = vadd.f32 %v814_v49, %v813_v45 }
 0x187   : > { %v817_v5 = vadd.f32 %v816_v52, %v815_v51 }
 0x189   : > { %v818_v63 = vrot.slane %v817_v5, 4 }
 0x18b   : > { %v819_v9 = vadd.f32 %v818_v63, %v817_v5 }
 0x18d   : > { %v820_v20 = vrot.slane %v819_v9, 2 }
 0x18f   : > { %v821_v23 = vadd.f32 %v820_v20, %v819_v9 }
 0x191   : > { %v822_v61 = vrot.slane %v821_v23, 1 }
 0x193   : > { %v823_v31 = vadd.f32 %v822_v61, %v821_v23 }
 0x195   : > { %v1646_v36 = vmul.f32 %v838_v13, %v823_v31  ;;  %926 = vst.msk [vmem:[%s1644_s20] sm:$0x1] %vm925_vm11, %v823_v31 }
 0x197   : > { %v840_v53 = vsub.f32 %v1402_v29, %v1646_v36  ;;  %v841_v28 = vsub.f32 %v1407_v55, %v1646_v36  ;;  %v842_v37 = vsub.f32 %v1412_v56, %v1646_v36  ;;  %v843_v38 = vsub.f32 %v1417_v57, %v1646_v36 }
 0x198   : > { %v844_v2 = vsub.f32 %v1422_v58, %v1646_v36  ;;  %v845_v56 = vsub.f32 %v1434_v62, %v1646_v36  ;;  %v846_v7 = vsub.f32 %v1461_v10, %v1646_v36  ;;  %v847_v43 = vsub.f32 %v1501_v25, %v1646_v36 }
 0x199   : > { %v856_v39 = vsel %vm719_vm3, %v840_v53, 0.0  ;;  %v857_v40 = vsel %vm720_vm2, %v841_v28, 0.0  ;;  %v858_v29 = vsel %vm721_vm4, %v842_v37, 0.0  ;;  %v859_v57 = vsel %vm722_vm5, %v843_v38, 0.0 }
 0x19a   : > { %v872_v41 = vmul.f32 %v856_v39, %v856_v39  ;;  %v873_v55 = vmul.f32 %v857_v40, %v857_v40  ;;  %v874_v42 = vmul.f32 %v858_v29, %v858_v29  ;;  %v860_v3 = vsel %vm723_vm6, %v844_v2, 0.0 }
 0x19b   : > { %v875_v21 = vmul.f32 %v859_v57, %v859_v57  ;;  %v861_v62 = vsel %vm724_vm7, %v845_v56, 0.0  ;;  %v876_v45 = vmul.f32 %v860_v3, %v860_v3  ;;  %v848_v10 = vsub.f32 %v1542_v44, %v1646_v36 }
 0x19c   : > { %v888_v58 = vsel %vm554_vm1, %v872_v41, 0.0  ;;  %v889_v8 = vsel %vm554_vm1, %v873_v55, 0.0  ;;  %v891_v47 = vsel %vm554_vm1, %v874_v42, 0.0  ;;  %v862_v14 = vsel %vm725_vm8, %v846_v7, 0.0 }
 0x19d   : > { %v890_v11 = vadd.f32 %v889_v8, %v888_v58  ;;  %v877_v49 = vmul.f32 %v861_v62, %v861_v62  ;;  %v893_v51 = vsel %vm554_vm1, %v875_v21, 0.0  ;;  %v849_v25 = vsub.f32 %v1586_v17, %v1646_v36 }
 0x19e   : > { %v863_v18 = vsel %vm726_vm9, %v847_v43, 0.0  ;;  %v878_v5 = vmul.f32 %v862_v14, %v862_v14  ;;  %v895_v6 = vsel %vm554_vm1, %v876_v45, 0.0  ;;  %v850_v44 = vsub.f32 %v1427_v60, %v1646_v36 }
 0x19f   : > { %v892_v48 = vadd.f32 %v891_v47, %v890_v11  ;;  %v864_v24 = vsel %vm727_vm10, %v848_v10, 0.0  ;;  %v879_v4 = vmul.f32 %v863_v18, %v863_v18  ;;  %v897_v9 = vsel %vm554_vm1, %v877_v49, 0.0 }
 0x1a0   : > { %v851_v17 = vsub.f32 %v1442_v1, %v1646_v36  ;;  %v865_v30 = vsel %vm728_vm12, %v849_v25, 0.0  ;;  %v880_v19 = vmul.f32 %v864_v24, %v864_v24  ;;  %v899_v20 = vsel %vm554_vm1, %v878_v5, 0.0 }
 0x1a1   : > { %v894_v52 = vadd.f32 %v893_v51, %v892_v48  ;;  %v852_v60 = vsub.f32 %v1477_v16, %v1646_v36  ;;  %vm1748_vm2 = vcmp.lt.s32.totalorder %v1546_v46, 1024  ;;  %v881_v23 = vmul.f32 %v865_v30, %v865_v30 }
 0x1a2   : > { %v866_v34 = vsel %vm1748_vm2, %v850_v44, 0.0  ;;  %v901_v26 = vsel %vm554_vm1, %v879_v4, 0.0  ;;  %v853_v1 = vsub.f32 %v1525_v35, %v1646_v36  ;;  %vm1749_vm3 = vcmp.lt.s32.totalorder %v1565_v54, 1024 }
 0x1a3   : > { %v896_v63 = vadd.f32 %v895_v6, %v894_v52  ;;  %v867_v50 = vsel %vm1749_vm3, %v851_v17, 0.0  ;;  %v882_v13 = vmul.f32 %v866_v34, %v866_v34  ;;  %v903_v31 = vsel %vm554_vm1, %v880_v19, 0.0 }
 0x1a4   : > { %v854_v16 = vsub.f32 %v1569_v59, %v1646_v36  ;;  %vm1750_vm4 = vcmp.lt.s32.totalorder %v1573_v0, 1024  ;;  %v883_v28 = vmul.f32 %v867_v50, %v867_v50  ;;  %v905_v37 = vsel %vm554_vm1, %v881_v23, 0.0 }
 0x1a5   : > { %v898_v12 = vadd.f32 %v897_v9, %v896_v63  ;;  %v868_v46 = vsel %vm1750_vm4, %v852_v60, 0.0  ;;  %v855_v35 = vsub.f32 %v1608_v32, %v1646_v36  ;;  %vm1751_vm5 = vcmp.lt.s32.totalorder %v1584_v15, 1024 }
 0x1a6   : > { %v869_v54 = vsel %vm1751_vm5, %v853_v1, 0.0  ;;  %v884_v39 = vmul.f32 %v868_v46, %v868_v46  ;;  %v907_v40 = vsel %vm554_vm1, %v882_v13, 0.0  ;;  %vm1752_vm6 = vcmp.lt.s32.totalorder %v1601_v27, 1024 }
 0x1a7   : > { %v900_v22 = vadd.f32 %v899_v20, %v898_v12  ;;  %v870_v59 = vsel %vm1752_vm6, %v854_v16, 0.0  ;;  %v885_v0 = vmul.f32 %v869_v54, %v869_v54  ;;  %v909_v29 = vsel %vm554_vm1, %v883_v28, 0.0 }
 0x1a8   : > { %vm1753_vm7 = vcmp.lt.s32.totalorder %v1611_v33, 1024  ;;  %v886_v56 = vmul.f32 %v870_v59, %v870_v59  ;;  %v911_v15 = vsel %vm554_vm1, %v884_v39, 0.0 }
 0x1a9   : > { %v902_v61 = vadd.f32 %v901_v26, %v900_v22  ;;  %v871_v41 = vsel %vm1753_vm7, %v855_v35, 0.0  ;;  %v913_v57 = vsel %vm554_vm1, %v885_v0, 0.0 }
 0x1aa   : > { %v887_v36 = vmul.f32 %v871_v41, %v871_v41  ;;  %v915_v27 = vsel %vm554_vm1, %v886_v56, 0.0 }
 0x1ab   : > { %v904_v53 = vadd.f32 %v903_v31, %v902_v61 }
 0x1ac   : > { %v917_v3 = vsel %vm554_vm1, %v887_v36, 0.0 }
 0x1ad   : > { %v906_v38 = vadd.f32 %v905_v37, %v904_v53 }
 0x1af   : > { %v908_v2 = vadd.f32 %v907_v40, %v906_v38 }
 0x1b1   : > { %v910_v55 = vadd.f32 %v909_v29, %v908_v2 }
 0x1b3   : > { %v912_v32 = vadd.f32 %v911_v15, %v910_v55 }
 0x1b5   : > { %v914_v42 = vadd.f32 %v913_v57, %v912_v32 }
 0x1b7   : > { %v916_v7 = vadd.f32 %v915_v27, %v914_v42 }
 0x1b9   : > { %v918_v21 = vadd.f32 %v917_v3, %v916_v7 }
 0x1bb   : > { %v919_v58 = vrot.slane %v918_v21, 4 }
 0x1bd   : > { %v920_v8 = vadd.f32 %v919_v58, %v918_v21 }
 0x1bf   : > { %v921_v33 = vrot.slane %v920_v8, 2 }
 0x1c1   : > { %v922_v43 = vadd.f32 %v921_v33, %v920_v8 }
 0x1c3   : > { %v923_v62 = vrot.slane %v922_v43, 1 }
 0x1c5   : > { %v924_v11 = vadd.f32 %v923_v62, %v922_v43 }
 0x1c7   : > { %927 = vst.msk [vmem:[%s1644_s20 + $0x1] sm:$0x1] %vm925_vm11, %v924_v11 }
 0x1c8 PF: > { %s18_s21 = sadd.s32 1, %s1157_s21  }
 0x1c9   : > { %p15_p9 = scmp.ge.s32.totalorder %s18_s21, 10  }
 0x1cb   :  { %17 = sbr.rel (!%p15_p9) target bundleno = 1 (0x1), region = 90 }
 0x1d0   :  { %964 = vsyncpa [#allocation3], 1 }
 0x1d1   :  { %966 = vsyncpa [#allocation3 + $0x1], 1 }

</bundles_post_ra>
